<compile_context>
chip_gen: v7x
topology: tpu7x:2x2x1
jax: 0.10.0
libtpu: 0.0.40
codegen_flags: <defaults>
</compile_context>

<pallas_src>
import functools

import jax
import jax.numpy as jnp
from jax import lax
from jax.experimental import pallas as pl
from jax.experimental.pallas import tpu as pltpu


def _patch_merge_kernel(x_ref, we_ref, wo_ref, cb_ref, o_ref, *, eps, inv_n):
    # x_ref:  (trows, 2, W/2, 2C)  [:,0]=even image rows ([x0|x2]),
    #                              [:,1]=odd  image rows ([x1|x3])
    # we_ref: (2C, Cout) bf16  gamma-folded weight rows for [x0|x2]
    # wo_ref: (2C, Cout) bf16  gamma-folded weight rows for [x1|x3]
    # cb_ref: (2, Cout)  f32   row0 = ones @ (gamma*W) (colsum), row1 = beta @ W
    # o_ref:  (trows * W/2, Cout)
    trows, _, w2, c2 = x_ref.shape
    rows = trows * w2

    xe = x_ref[:, 0, :, :].reshape(rows, c2)
    xo = x_ref[:, 1, :, :].reshape(rows, c2)
    # TODO(synk): for Swin resolutions with W/2 % 8 != 0 (28/14/7) this sublane
    # merge relayouts; a fully 3D (trows, W/2, 2C) compute path needs
    # non-batched 3D dot support in Mosaic, so the 2D path is kept here.

    # Single-pass f32 LayerNorm statistics over the (virtual) 4C merged feature.
    xe32 = xe.astype(jnp.float32)
    xo32 = xo.astype(jnp.float32)
    s = jnp.sum(xe32, axis=-1, keepdims=True) + jnp.sum(xo32, axis=-1, keepdims=True)
    sq = jnp.sum(xe32 * xe32, axis=-1, keepdims=True) + jnp.sum(
        xo32 * xo32, axis=-1, keepdims=True
    )
    mean = s * inv_n
    var = jnp.maximum(sq * inv_n - mean * mean, 0.0)   # biased var (torch LN), clamped
    scale = lax.rsqrt(var + eps)

    # Raw bf16 activations straight to the MXU; LN is applied in the epilogue.
    acc = jnp.dot(xe.astype(jnp.bfloat16), we_ref[...],
                  preferred_element_type=jnp.float32)
    acc = acc + jnp.dot(xo.astype(jnp.bfloat16), wo_ref[...],
                        preferred_element_type=jnp.float32)

    colsum = cb_ref[0:1, :]
    bias = cb_ref[1:2, :]
    out = scale * acc + (bias - (mean * scale) * colsum)
    o_ref[...] = out.astype(o_ref.dtype)
    # TODO(synk): when Cout % 128 != 0 (64 here, 192 in Swin stage 1) the store
    # is lane-masked; packing k rows per 128-lane slab requires a sublane->lane
    # reshape that Mosaic may not lower, so it is deferred.


def _pick_trows(bh2, w2, target_rows):
    """# of (B*H/2) row-groups per grid step; each group yields W/2 output rows."""
    cap = max(1, min(bh2, target_rows // max(1, w2)))
    if bh2 >= 2:
        cap = min(cap, bh2 // 2)                       # at least 2 grid steps
    divs = [t for t in range(1, cap + 1) if bh2 % t == 0]
    # Keep the (8,128) sublane rule on the output block, else fall back to one
    # full-array step (block == full dim is always legal).
    ok = [t for t in divs if (t * w2) % 8 == 0]
    if not ok:
        return bh2
    tmax = max(ok)
    # Prefer an even number of grid steps (keeps both v7x TensorCores busy) as
    # long as it costs at most 2x in tile size.
    even = [t for t in ok if (bh2 // t) % 2 == 0 and 2 * t >= tmax]
    return max(even) if even else tmax


def _vmem_bytes(trows, w2, c2, cout, in_isz, out_isz):
    tile_rows = trows * w2
    io = 2 * (trows * 2 * w2 * c2 * in_isz) + 2 * (tile_rows * cout * out_isz)
    wts = 2 * (2 * c2 * cout * 2 + 2 * cout * 4)       # dbl-buffered bf16 W + f32 cb
    # in-kernel temporaries: f32 xe/xo for stats, bf16 MXU feeds, f32 acc, cast
    tmp = tile_rows * (2 * c2 * 4 + 2 * c2 * 2 + cout * 4 + cout * out_isz)
    return io + wts + tmp


def _vmem_budget():
    cap = 128 << 20
    try:
        cap = int(pltpu.get_tpu_info().vmem_capacity_bytes)   # 64 MiB on v7x
    except Exception:
        pass
    return int(min(48 << 20, cap * 3 // 4))


def patch_merging_forward(x, input_resolution, gamma, beta, w_t, *, eps=1e-5):
    """x: (B, L, C); w_t: (4C, 2C) (transposed torch Linear weight).
    Returns (B, L//4, 2C) in x.dtype — pass bf16 x for bf16 end-to-end."""
    H, W = input_resolution
    B, L, C = x.shape
    assert L == H * W, "input feature has wrong size"
    assert H % 2 == 0 and W % 2 == 0, f"x size ({H}*{W}) are not even."

    H2, W2 = H // 2, W // 2
    BH2 = B * H2
    C2 = 2 * C
    Cout = w_t.shape[1]
    M = BH2 * W2

    # Free view: (B, L, C) -> (B*H/2, 2, W/2, 2C).
    #   [:, 0, w2, :] = [x[b,2h2,2w2,:]   | x[b,2h2,2w2+1,:]]   = [x0 | x2]
    #   [:, 1, w2, :] = [x[b,2h2+1,2w2,:] | x[b,2h2+1,2w2+1,:]] = [x1 | x3]
    x_r = x.reshape(BH2, 2, W2, C2)

    # Trace-time constant folding of the LN affine + torch concat order.
    w_f32 = w_t.astype(jnp.float32)
    wp = gamma.astype(jnp.float32)[:, None] * w_f32                         # (4C, Cout)
    w_even = jnp.concatenate([wp[0:C], wp[2 * C:3 * C]], axis=0).astype(jnp.bfloat16)
    w_odd = jnp.concatenate([wp[C:2 * C], wp[3 * C:4 * C]], axis=0).astype(jnp.bfloat16)
    colsum = jnp.sum(wp, axis=0, keepdims=True)                             # (1, Cout)
    bias = (beta.astype(jnp.float32) @ w_f32).reshape(1, Cout)              # (1, Cout)
    cb = jnp.concatenate([colsum, bias], axis=0)                            # (2, Cout)

    # VMEM-aware tile choice.
    in_isz = x.dtype.itemsize
    out_isz = in_isz
    budget = _vmem_budget()
    target_rows = 1024
    while True:
        trows = _pick_trows(BH2, W2, target_rows)
        if (_vmem_bytes(trows, W2, C2, Cout, in_isz, out_isz) <= budget
                or target_rows <= W2):
            break
        target_rows //= 2
    tile_rows = trows * W2
    grid = (BH2 // trows,)

    kernel = functools.partial(_patch_merge_kernel, eps=eps, inv_n=1.0 / (4 * C))
    out = pl.pallas_call(
        kernel,
        out_shape=jax.ShapeDtypeStruct((M, Cout), x.dtype),
        grid_spec=pltpu.PrefetchScalarGridSpec(
            num_scalar_prefetch=0,
            grid=grid,
            in_specs=[
                pl.BlockSpec((trows, 2, W2, C2), lambda i: (i, 0, 0, 0)),  # x view
                pl.BlockSpec((C2, Cout), lambda i: (0, 0)),                # W_even
                pl.BlockSpec((C2, Cout), lambda i: (0, 0)),                # W_odd
                pl.BlockSpec((2, Cout), lambda i: (0, 0)),                 # [colsum; bias]
            ],
            out_specs=pl.BlockSpec((tile_rows, Cout), lambda i: (i, 0)),
        ),
        compiler_params=pltpu.CompilerParams(
            dimension_semantics=("parallel",),
            vmem_limit_bytes=budget,
        ),
    )(x_r, w_even, w_odd, cb)
    # TODO(synk): grid-invariant weight operands are still double-buffered by
    # the default pipeliner; single-buffering them (pl.Buffered(1)) would save
    # a few MiB on v7x late stages — accounted for in the VMEM estimate above.

    return out.reshape(B, L // 4, Cout)


def patch_merging_reference(x, input_resolution, gamma, beta, w_t, *, eps=1e-5):
    """Pure-JAX f32 reference matching the PyTorch module exactly."""
    H, W = input_resolution
    B, L, C = x.shape
    xg = x.astype(jnp.float32).reshape(B, H, W, C)
    x0 = xg[:, 0::2, 0::2, :]
    x1 = xg[:, 1::2, 0::2, :]
    x2 = xg[:, 0::2, 1::2, :]
    x3 = xg[:, 1::2, 1::2, :]
    xm = jnp.concatenate([x0, x1, x2, x3], axis=-1).reshape(B, -1, 4 * C)
    mean = jnp.mean(xm, axis=-1, keepdims=True)
    var = jnp.mean((xm - mean) ** 2, axis=-1, keepdims=True)
    xn = (xm - mean) / jnp.sqrt(var + eps)
    y = xn * gamma + beta
    return y @ w_t


if __name__ == "__main__":
    # Module config: input_resolution=(16, 16), dim=32 -> x: (B, 256, 32)
    B, H, W, dim = 2, 16, 16, 32
    key = jax.random.PRNGKey(0)
    kx, kw, kg, kb = jax.random.split(key, 4)

    x = jax.random.normal(kx, (B, H * W, dim), dtype=jnp.float32)

    # reduction: nn.Linear(4*dim, 2*dim, bias=False) -> weight (2*dim, 4*dim);
    # we pass its transpose (4*dim, 2*dim) so the kernel computes y @ W^T.
    w = jax.random.normal(kw, (2 * dim, 4 * dim), dtype=jnp.float32) * 0.02
    w_t = w.T
    # norm: nn.LayerNorm(4*dim) affine params (perturbed so the path is exercised).
    gamma = 1.0 + 0.1 * jax.random.normal(kg, (4 * dim,), dtype=jnp.float32)
    beta = 0.1 * jax.random.normal(kb, (4 * dim,), dtype=jnp.float32)

    ref = patch_merging_reference(x, (H, W), gamma, beta, w_t)

    # f32 I/O path (matches the torch module's default dtype).
    out = jax.block_until_ready(patch_merging_forward(x, (H, W), gamma, beta, w_t))
    assert out.shape == (B, (H * W) // 4, 2 * dim), out.shape
    max_err = float(jnp.max(jnp.abs(out - ref)))
    assert jnp.allclose(out, ref, atol=1e-2, rtol=1e-2), max_err

    # bf16 end-to-end path (halves HBM traffic on an HBM-bound kernel).
    out_bf = jax.block_until_ready(
        patch_merging_forward(x.astype(jnp.bfloat16), (H, W), gamma, beta, w_t))
    assert out_bf.dtype == jnp.bfloat16
    max_err_bf = float(jnp.max(jnp.abs(out_bf.astype(jnp.float32) - ref)))
    assert jnp.allclose(out_bf.astype(jnp.float32), ref, atol=5e-2, rtol=5e-2), max_err_bf

    print("KERNEL_OK")
</pallas_src>

<mosaic_0001>
module attributes {stable_mosaic.version = 11 : i64} {
  func.func @_patch_merge_kernel(%arg0: i32, %arg1: memref<8x2x8x64xf32, #tpu.memory_space<vmem>>, %arg2: memref<64x64xbf16, #tpu.memory_space<vmem>>, %arg3: memref<64x64xbf16, #tpu.memory_space<vmem>>, %arg4: memref<2x64xf32, #tpu.memory_space<vmem>>, %arg5: memref<64x64xf32, #tpu.memory_space<vmem>>) attributes {dimension_semantics = [#tpu.dimension_semantics<parallel>], iteration_bounds = array<i64: 2>, scalar_prefetch = 0 : i64, scratch_operands = 0 : i64, tpu.core_type = #tpu.core_type<tc>, window_params = [{transform_indices = @transform_0, window_bounds = array<i64: 8, 2, 8, 64>}, {pipeline_mode = #tpu.pipeline_mode<synchronous>, transform_indices = @transform_1, window_bounds = array<i64: 64, 64>}, {pipeline_mode = #tpu.pipeline_mode<synchronous>, transform_indices = @transform_2, window_bounds = array<i64: 64, 64>}, {pipeline_mode = #tpu.pipeline_mode<synchronous>, transform_indices = @transform_3, window_bounds = array<i64: 2, 64>}, {transform_indices = @transform_4, window_bounds = array<i64: 64, 64>}]} {
    %c0 = arith.constant 0 : index
    %c0_0 = arith.constant 0 : index
    %c0_1 = arith.constant 0 : index
    %c0_2 = arith.constant 0 : index
    %0 = vector.load %arg1[%c0, %c0_0, %c0_1, %c0_2] : memref<8x2x8x64xf32, #tpu.memory_space<vmem>>, vector<8x1x8x64xf32>
    %1 = vector.shape_cast %0 : vector<8x1x8x64xf32> to vector<8x8x64xf32>
    %2 = vector.shape_cast %1 : vector<8x8x64xf32> to vector<64x64xf32>
    %c0_3 = arith.constant 0 : index
    %c1 = arith.constant 1 : index
    %c0_4 = arith.constant 0 : index
    %c0_5 = arith.constant 0 : index
    %3 = vector.load %arg1[%c0_3, %c1, %c0_4, %c0_5] : memref<8x2x8x64xf32, #tpu.memory_space<vmem>>, vector<8x1x8x64xf32>
    %4 = vector.shape_cast %3 : vector<8x1x8x64xf32> to vector<8x8x64xf32>
    %5 = vector.shape_cast %4 : vector<8x8x64xf32> to vector<64x64xf32>
    %cst = arith.constant dense<0.000000e+00> : vector<64xf32>
    %6 = vector.multi_reduction <add>, %2, %cst [1] : vector<64x64xf32> to vector<64xf32>
    %7 = vector.shape_cast %6 : vector<64xf32> to vector<64x1xf32>
    %cst_6 = arith.constant dense<0.000000e+00> : vector<64xf32>
    %8 = vector.multi_reduction <add>, %5, %cst_6 [1] : vector<64x64xf32> to vector<64xf32>
    %9 = vector.shape_cast %8 : vector<64xf32> to vector<64x1xf32>
    %10 = arith.addf %7, %9 : vector<64x1xf32>
    %11 = arith.mulf %2, %2 : vector<64x64xf32>
    %cst_7 = arith.constant dense<0.000000e+00> : vector<64xf32>
    %12 = vector.multi_reduction <add>, %11, %cst_7 [1] : vector<64x64xf32> to vector<64xf32>
    %13 = vector.shape_cast %12 : vector<64xf32> to vector<64x1xf32>
    %14 = arith.mulf %5, %5 : vector<64x64xf32>
    %cst_8 = arith.constant dense<0.000000e+00> : vector<64xf32>
    %15 = vector.multi_reduction <add>, %14, %cst_8 [1] : vector<64x64xf32> to vector<64xf32>
    %16 = vector.shape_cast %15 : vector<64xf32> to vector<64x1xf32>
    %17 = arith.addf %13, %16 : vector<64x1xf32>
    %cst_9 = arith.constant 7.812500e-03 : f32
    %18 = vector.broadcast %cst_9 : f32 to vector<64x1xf32>
    %19 = arith.mulf %10, %18 : vector<64x1xf32>
    %cst_10 = arith.constant 7.812500e-03 : f32
    %20 = vector.broadcast %cst_10 : f32 to vector<64x1xf32>
    %21 = arith.mulf %17, %20 : vector<64x1xf32>
    %22 = arith.mulf %19, %19 : vector<64x1xf32>
    %23 = arith.subf %21, %22 : vector<64x1xf32>
    %cst_11 = arith.constant 0.000000e+00 : f32
    %24 = vector.broadcast %cst_11 : f32 to vector<64x1xf32>
    %25 = arith.maximumf %23, %24 : vector<64x1xf32>
    %cst_12 = arith.constant 9.99999974E-6 : f32
    %26 = vector.broadcast %cst_12 : f32 to vector<64x1xf32>
    %27 = arith.addf %25, %26 : vector<64x1xf32>
    %28 = math.rsqrt %27 : vector<64x1xf32>
    %29 = arith.truncf %2 : vector<64x64xf32> to vector<64x64xbf16>
    %c0_13 = arith.constant 0 : index
    %c0_14 = arith.constant 0 : index
    %30 = vector.load %arg2[%c0_13, %c0_14] : memref<64x64xbf16, #tpu.memory_space<vmem>>, vector<64x64xbf16>
    %cst_15 = arith.constant dense<0.000000e+00> : vector<64x64xf32>
    %31 = tpu.matmul %29, %30, %cst_15 {dimension_numbers = #tpu.dot_dimension_numbers<[1], [0], [0], [1], [0, 0, 1, 1], [], []>} : vector<64x64xbf16>, vector<64x64xbf16>, vector<64x64xf32> -> vector<64x64xf32>
    %32 = arith.truncf %5 : vector<64x64xf32> to vector<64x64xbf16>
    %c0_16 = arith.constant 0 : index
    %c0_17 = arith.constant 0 : index
    %33 = vector.load %arg3[%c0_16, %c0_17] : memref<64x64xbf16, #tpu.memory_space<vmem>>, vector<64x64xbf16>
    %cst_18 = arith.constant dense<0.000000e+00> : vector<64x64xf32>
    %34 = tpu.matmul %32, %33, %cst_18 {dimension_numbers = #tpu.dot_dimension_numbers<[1], [0], [0], [1], [0, 0, 1, 1], [], []>} : vector<64x64xbf16>, vector<64x64xbf16>, vector<64x64xf32> -> vector<64x64xf32>
    %35 = arith.addf %31, %34 : vector<64x64xf32>
    %c0_19 = arith.constant 0 : index
    %c0_20 = arith.constant 0 : index
    %36 = vector.load %arg4[%c0_19, %c0_20] : memref<2x64xf32, #tpu.memory_space<vmem>>, vector<1x64xf32>
    %c1_21 = arith.constant 1 : index
    %c0_22 = arith.constant 0 : index
    %37 = vector.load %arg4[%c1_21, %c0_22] : memref<2x64xf32, #tpu.memory_space<vmem>>, vector<1x64xf32>
    %38 = vector.broadcast %28 : vector<64x1xf32> to vector<64x64xf32>
    %39 = arith.mulf %38, %35 : vector<64x64xf32>
    %40 = arith.mulf %19, %28 : vector<64x1xf32>
    %41 = vector.broadcast %40 : vector<64x1xf32> to vector<64x64xf32>
    %42 = vector.broadcast %36 : vector<1x64xf32> to vector<64x64xf32>
    %43 = arith.mulf %41, %42 : vector<64x64xf32>
    %44 = vector.broadcast %37 : vector<1x64xf32> to vector<64x64xf32>
    %45 = arith.subf %44, %43 : vector<64x64xf32>
    %46 = arith.addf %39, %45 : vector<64x64xf32>
    %c0_23 = arith.constant 0 : index
    %c0_24 = arith.constant 0 : index
    %47 = vector.load %arg5[%c0_23, %c0_24] : memref<64x64xf32, #tpu.memory_space<vmem>>, vector<64x64xf32>
    tpu.vector_store %arg5[%c0_23, %c0_24], %46 {strides = array<i32>} : memref<64x64xf32, #tpu.memory_space<vmem>>, vector<64x64xf32>,
    return
  }
  func.func @transform_0(%arg0: i32) -> (i32, i32, i32, i32) {
    %c0_i32 = arith.constant 0 : i32
    %c0_i32_0 = arith.constant 0 : i32
    %c0_i32_1 = arith.constant 0 : i32
    %c0_i32_2 = arith.constant 0 : i32
    return %arg0, %c0_i32, %c0_i32_0, %c0_i32_1 : i32, i32, i32, i32
  }
  func.func @transform_1(%arg0: i32) -> (i32, i32) {
    %c0_i32 = arith.constant 0 : i32
    %c0_i32_0 = arith.constant 0 : i32
    %c0_i32_1 = arith.constant 0 : i32
    return %c0_i32, %c0_i32_0 : i32, i32
  }
  func.func @transform_2(%arg0: i32) -> (i32, i32) {
    %c0_i32 = arith.constant 0 : i32
    %c0_i32_0 = arith.constant 0 : i32
    %c0_i32_1 = arith.constant 0 : i32
    return %c0_i32, %c0_i32_0 : i32, i32
  }
  func.func @transform_3(%arg0: i32) -> (i32, i32) {
    %c0_i32 = arith.constant 0 : i32
    %c0_i32_0 = arith.constant 0 : i32
    %c0_i32_1 = arith.constant 0 : i32
    return %c0_i32, %c0_i32_0 : i32, i32
  }
  func.func @transform_4(%arg0: i32) -> (i32, i32) {
    %c0_i32 = arith.constant 0 : i32
    %c0_i32_0 = arith.constant 0 : i32
    return %arg0, %c0_i32 : i32, i32
  }
}

</mosaic_0001>

<bundles_post_ra>
// kernel: tpu_custom_call.1
= control target key start
LH: loop header
LB: loop body
LE: loop exit
PB: predicated region body
PF: predicated region fallthrough
CT: control target
= control target key end

     0   :  { %9 = vsyncpa [#allocation3], 0  ;;  %s1568_s0 = inlined_call_operand.hbm [shape: f32[16,2,8,64], index: 0, kind: input, shape index: {}]   ;;  %s1569_s1 = inlined_call_operand.hbm [shape: bf16[64,64], index: 1, kind: input, shape index: {}]   ;;  %s1570_s2 = inlined_call_operand.hbm [shape: bf16[64,64], index: 2, kind: input, shape index: {}]   ;;  %s1571_s3 = inlined_call_operand.vmem [shape: f32[2,64], index: 3, kind: input, shape index: {}]   ;;  %s1572_s4 = inlined_call_operand.vmem [shape: f32[128,64], index: 4, kind: output, shape index: {}]  }
   0x1   :  { %11 = vsyncpa [#allocation3 + $0x1], 0 }
   0x2   :  { %12 = vsyncpa [#allocation5], 0  ;;  %s1171_s15 = smov 0   ;;  %s1173_s16 = smov 0  }
   0x3   :  { %s1175_s17 = smov 0   ;;  %s1177_s18 = smov 0  }
   0x4 LB: > { %s823_s19 = sadd.s32 4294967295, %s1137_s18   ;;  %p38_p0 = scmp.ne.s32.totalorder %s1129_s16, %s1125_s15  ;;  %s1137_s18 = sphi %s1177_s18, %s1588_s18   ;;  %s1133_s17 = sphi %s1175_s17, %s1587_s17   ;;  %s1129_s16 = sphi %s1173_s16, %s1586_s16   ;;  %s1125_s15 = sphi %s1171_s15, %s1585_s15  }
   0x5   : > { %p1193_p1 = scmp.eq.s32.totalorder %s823_s19, 0  ;;  %p825_p2 = scmp.ge.s32.totalorder %s1137_s18, 1 }
   0x6   : > { %p138_p3 = scmp.lt.s32.totalorder %s1137_s18, 3  ;;  %s1139_s23 = smov [#allocation4]  }
   0x7   : > { %s1577_s20 = scalar_select %p1193_p1, 1, 0 }
   0x8   : > { %p1201_p4 = por %p1193_p1, %p38_p0  ;;  %p1205_p5 = pnand %p825_p2, %p138_p3 }
   0x9   : > { %s150_s24 = sshll.u32 %s1139_s23, 4  ;;  %s1140_s26 = smov [#allocation6]   ;;  %s151_s24 = int_to_ptr.vmem [resolvable:$true] %s150_s24 }
   0xa   : > { %s1578_s21 = scalar_select %p1201_p4, 1, 0 }
   0xb   : > { %s1579_s22 = scalar_select %p1205_p5, 1, 0 }
   0xc   : > { %p935_p6 = pneg %p1205_p5  ;;  %s163_s27 = sshll.u32 %s1140_s26, 4  ;;  %s1217_s27 = int_to_ptr.vmem [resolvable:$true] %s163_s27 }
   0xd   : > { %s1013_s30 = scalar_lea.hbm %s1569_s1, 512 }
   0xe   : > { %p1213_p7 = pnand %p935_p6, %p1193_p1  ;;  %p1014_p8 = scmp.ne.s32.totalorder %s1569_s1, %s1013_s30 }
   0xf   : > { %p1020_p12 = scmp.lt.u32.totalorder %s1013_s30, %s1569_s1 }
  0x10   : > { %p1015_p9 = pneg %p1213_p7 }
  0x12   : > { %p1016_p10 = pnand %p1015_p9, %p1014_p8 }
  0x14   : > { %p1017_p11 = pneg %p1016_p10 }
  0x16   : > { %p1022_p13 = pnand %p1020_p12, %p1017_p11 }
  0x18   : > { %1025 = shalt.err (!%p1022_p13)
}
  0x19   : > { %s1026_s9 = scalar_lea.vmem %s151_s24, 512  ;;  %p1034_p6 = scmp.lt.s32.totalorder %s151_s24, %s151_s24 }
  0x1a   : > { %p1027_p0 = scmp.ne.s32.totalorder %s151_s24, %s1026_s9  ;;  %p1035_p1 = scmp.lt.s32.totalorder %s1026_s9, %s1026_s9 }
  0x1c   : > { %p1029_p2 = pnand %p1027_p0, %p1015_p9  ;;  %p1036_p4 = por %p1035_p1, %p1034_p6 }
  0x1e   : > { %p1030_p3 = pneg %p1029_p2 }
  0x20   : > { %p1037_p5 = pnand %p1036_p4, %p1030_p3 }
  0x22   : > { %1040 = shalt.err (!%p1037_p5)
}
  0x23   : > { %s1141_s10 = smov 64   ;;  %s1142_s11 = smov 4  }
  0x24   : > { %938 = dma.hbm_to_vmem [thread:$0]  (!%p1213_p7), %s1569_s1, 512, %s151_s24, [#allocation5], %s1141_s10, %s1141_s10, %s1142_s11  }
  0x25   : > { %s1041_s23 = scalar_lea.hbm %s1570_s2, 512 }
  0x26   : > { %p1042_p8 = scmp.ne.s32.totalorder %s1570_s2, %s1041_s23  ;;  %p1048_p5 = scmp.lt.u32.totalorder %s1041_s23, %s1570_s2 }
  0x28   : > { %p1044_p1 = pnand %p1042_p8, %p1015_p9 }
  0x2a   : > { %p1045_p4 = pneg %p1044_p1 }
  0x2c   : > { %p1050_p10 = pnand %p1048_p5, %p1045_p4 }
  0x2e   : > { %1053 = shalt.err (!%p1050_p10)
}
  0x2f   : > { %s1054_s24 = scalar_lea.vmem %s1217_s27, 512  ;;  %p1062_p0 = scmp.lt.s32.totalorder %s1217_s27, %s1217_s27 }
  0x30   : > { %p1055_p11 = scmp.ne.s32.totalorder %s1217_s27, %s1054_s24  ;;  %p1063_p2 = scmp.lt.s32.totalorder %s1054_s24, %s1054_s24 }
  0x32   : > { %p1057_p12 = pnand %p1055_p11, %p1015_p9  ;;  %p1064_p3 = por %p1063_p2, %p1062_p0 }
  0x34   : > { %p1058_p13 = pneg %p1057_p12 }
  0x36   : > { %p1065_p6 = pnand %p1064_p3, %p1058_p13 }
  0x38   : > { %1068 = shalt.err (!%p1065_p6)
}
  0x39   : > { %941 = dma.hbm_to_vmem [thread:$0]  (!%p1213_p7), %s1570_s2, 512, %s1217_s27, [#allocation5], %s1141_s10, %s1141_s10, %s1142_s11  }
  0x3a   : > { %s1267_s7 = sadd.s32 1, %s1137_s18   ;;  %s25_s8 = sadd.s32 1, %s1133_s17 }
  0x3b   : > { %s22_s25 = ssub.s32 %s1137_s18, %s1267_s7  ;;  %p32_p9 = scmp.ne.s32.totalorder %s1133_s17, %s1129_s16 }
  0x3c   : > { %p23_p8 = scmp.eq.s32.totalorder %s22_s25, 0  ;;  %p33_p1 = scmp.eq.s32.totalorder %s1137_s18, 0 }
  0x3d   : > { %p948_p4 = scmp.lt.s32.totalorder %s1137_s18, 2  ;;  %s180_s9 = sand.u32 1, %s1133_s17  }
  0x3e   : > { %s1278_s12 = scalar_select %p23_p8, %s1133_s17, %s25_s8  }
  0x3f   : > { %p34_p5 = por %p33_p1, %p32_p9  ;;  %s829_s13 = sshll.u32 %s180_s9, 7 }
  0x40   : > { %s868_s14 = sshll.u32 %s1137_s18, 11  ;;  %s184_s27 = scalar_lea.vmem [#allocation2], %s829_s13 }
  0x41   : > { %s1284_s26 = scalar_lea.hbm %s1568_s0, %s868_s14  ;;  %s192_s10 = sshll.u32 %s184_s27, 4  ;;  %s1290_s10 = int_to_ptr.vmem [resolvable:$true] %s192_s10 }
  0x42   : > { %p1286_p7 = pnand %p948_p4, %p34_p5  ;;  %s1292_s28 = scalar_lea.sflag [#allocation3], %s180_s9 }
  0x43   : > { %s1069_s29 = scalar_lea.hbm %s1284_s26, 2048  ;;  %s1074_s5 = scalar_lea.hbm %s1568_s0, 4096 }
  0x44   : > { %p1070_p10 = scmp.ne.s32.totalorder %s1284_s26, %s1069_s29  ;;  %p1071_p11 = pneg %p1286_p7 }
  0x45   : > { %p1075_p0 = scmp.lt.u32.totalorder %s1284_s26, %s1568_s0  ;;  %p1076_p2 = scmp.lt.u32.totalorder %s1074_s5, %s1069_s29 }
  0x46   : > { %p1072_p12 = pnand %p1071_p11, %p1070_p10  ;;  %p1078_p6 = scmp.lt.u32.totalorder %s1069_s29, %s1284_s26 }
  0x47   : > { %p1077_p3 = por %p1076_p2, %p1075_p0 }
  0x48   : > { %p1073_p13 = pneg %p1072_p12 }
  0x49   : > { %p1079_p9 = por %p1078_p6, %p1077_p3 }
  0x4b   : > { %p1080_p8 = pnand %p1079_p9, %p1073_p13 }
  0x4d   : > { %1083 = shalt.err (!%p1080_p8)
}
  0x4e   : > { %s1084_s25 = scalar_lea.vmem %s1290_s10, 2048  ;;  %s1143_s9 = smov [#allocation2]  }
  0x4f   : > { %p1085_p1 = scmp.ne.s32.totalorder %s1290_s10, %s1084_s25  ;;  %s1089_s13 = sshll.u32 %s1143_s9, 4  ;;  %s1090_s13 = int_to_ptr.vmem [resolvable:$false] %s1089_s13 }
  0x50   : > { %s1091_s14 = scalar_lea.vmem %s1090_s13, 4096  ;;  %p1092_p10 = scmp.lt.s32.totalorder %s1290_s10, %s1090_s13 }
  0x51   : > { %p1087_p4 = pnand %p1085_p1, %p1071_p11  ;;  %p1093_p12 = scmp.lt.s32.totalorder %s1091_s14, %s1084_s25 }
  0x53   : > { %p1088_p5 = pneg %p1087_p4  ;;  %p1094_p0 = por %p1093_p12, %p1092_p10 }
  0x55   : > { %p1095_p2 = pnand %p1094_p0, %p1088_p5 }
  0x57   : > { %1098 = shalt.err (!%p1095_p2)
}
  0x58   : > { %s1144_s15 = smov 128   ;;  %s1145_s23 = smov 8  }
  0x59   : > { %945 = dma.hbm_to_vmem [thread:$0]  (!%p1286_p7), %s1284_s26, 2048, %s1290_s10, %s1292_s28, %s1144_s15, %s1144_s15, %s1145_s23  }
  0x5a   : > { %p1582_p11 = scmp.ne.s32.totalorder %s1579_s22, 0 }
  0x5b   : > { %s206_s27 = sand.u32 (!%p1582_p11), 1, %s1129_s16   ;;  %p1583_p13 = scmp.ne.s32.totalorder (!%p1582_p11), %s1578_s21, 0 }
  0x5c   : > { %204 = sbr.rel (%p1582_p11) target bundleno = 353 (0x161), region = 36  ;;  %s834_s29 = sshll.u32 (!%p1582_p11), %s206_s27, 7 }
  0x5d   : > { %s207_s30 = scalar_lea.sflag (!%p1582_p11), [#allocation3], %s206_s27  ;;  %s1323_s24 = scalar_lea.vmem (!%p1582_p11), [#allocation2], %s834_s29 }
  0x63   : > { %1116 = dma.done.wait (%p1583_p13), %s207_s30, 2048  }
  0x64   : > { %1118 = vsyncadd (%p1583_p13), %s207_s30, 4294965248  ;;  %p1584_p3 = scmp.ne.s32.totalorder %s1577_s20, 0 }
  0x66   : > { %1120 = dma.done.wait (%p1584_p3), [#allocation5], 1024  }
  0x67   : > { %1122 = vsyncadd (%p1584_p3), [#allocation5], 4294966272  ;;  %vm268_vm0 = vcmask 523264   ;;  %v1334_v0 = vld [vmem:[%s1323_s24 + $0x20] sm:$0xff]  ;;  %v1344_v6 = vld [vmem:[%s1323_s24 + $0x30] sm:$0xff]  ;;  %s837_s20 = sshll.u32 %s823_s19, 3 }
  0x68   : > { %v1337_v1 = vld [vmem:[%s1323_s24] sm:$0xff]  ;;  %v275_v2 = vsel %vm268_vm0, %v1334_v0, 0.0  ;;  %v278_v7 = vsel %vm268_vm0, %v1344_v6, 0.0  ;;  %v1349_v8 = vld [vmem:[%s1323_s24 + $0x10] sm:$0xff]  ;;  %v991_v10 = vld [vmem:[#allocation6 + $0x8] sm:$0xff]   ;;  %v454_v32 = vpack.c.bf16 %v1344_v6, %v1334_v0  ;;  %v328_v52 = vmul.f32 %v1344_v6, %v1344_v6  ;;  %p245_p7 = scmp.lt.s32.totalorder %s837_s20, 15 }
  0x69   : > { %v269_v3 = vsel %vm268_vm0, %v1337_v1, 0.0  ;;  %v989_v4 = vld [vmem:[#allocation6] sm:$0xff]   ;;  %276 = vadd.xlane.f32.xlu1 %v275_v2  ;;  %v272_v9 = vsel %vm268_vm0, %v1349_v8, 0.0  ;;  %v992_v11 = vld [vmem:[#allocation4 + $0x8] sm:$0xff]   ;;  %v1354_v12 = vld [vmem:[%s1323_s24 + $0x50] sm:$0xff]  ;;  %v453_v14 = vpack.c.bf16 %v1349_v8, %v1337_v1  ;;  %v326_v48 = vmul.f32 %v1349_v8, %v1349_v8 }
  0x6a   : > { %v990_v5 = vld [vmem:[#allocation4] sm:$0xff]   ;;  %270 = vadd.xlane.f32.xlu0 %v269_v3  ;;  %885 = vmatprep.subr.bf16.mxu1 %v989_v4  ;;  %v284_v15 = vsel %vm268_vm0, %v1354_v12, 0.0  ;;  %v993_v17 = vld [vmem:[#allocation6 + $0x10] sm:$0xff]   ;;  %v995_v21 = vld [vmem:[#allocation6 + $0x18] sm:$0xff]   ;;  %v325_v49 = vmul.f32 %v1337_v1, %v1337_v1  ;;  %v327_v53 = vmul.f32 %v1334_v0, %v1334_v0  ;;  %v342_v54 = vsel %vm268_vm0, %v328_v52, 0.0  ;;  %s1590_s20 = smov (!%p245_p7, %s837_s20), 15 }
  0x6b   : > { %901 = vmatprep.subr.bf16.mxu0 %v990_v5  ;;  %886 = vmatpush3.bf16.msra.mxu1 %v989_v4  ;;  %v1357_v13 = vld [vmem:[%s1323_s24 + $0x40] sm:$0xff]  ;;  %v994_v18 = vld [vmem:[#allocation4 + $0x10] sm:$0xff]   ;;  %v996_v24 = vld [vmem:[#allocation4 + $0x18] sm:$0xff]   ;;  %v336_v50 = vsel %vm268_vm0, %v326_v48, 0.0  ;;  %v330_v56 = vmul.f32 %v1354_v12, %v1354_v12  ;;  %s838_s18 = sshll.u32 %s1590_s20, 3 }
  0x6c   : > { %902 = vmatpush3.bf16.msra.mxu0 %v990_v5  ;;  %887 = vmatprep.subr.bf16.mxu1 %v991_v10  ;;  %v281_v16 = vsel %vm268_vm0, %v1357_v13, 0.0  ;;  %v1366_v19 = vld [vmem:[%s1323_s24 + $0x70] sm:$0xff]  ;;  %v1369_v20 = vld [vmem:[%s1323_s24 + $0x60] sm:$0xff]  ;;  %v1377_v25 = vld [vmem:[%s1323_s24 + $0x8] sm:$0xff]  ;;  %v455_v36 = vpack.c.bf16 %v1354_v12, %v1357_v13  ;;  %v333_v51 = vsel %vm268_vm0, %v325_v49, 0.0  ;;  %v339_v55 = vsel %vm268_vm0, %v327_v53, 0.0  ;;  %s1527_s28 = scalar_lea.vmem %s1572_s4, %s838_s18 }
  0x6d   : > { %279 = vadd.xlane.f32.xlu1 %v278_v7  ;;  %903 = vmatprep.subr.bf16.mxu0 %v992_v11  ;;  %v290_v22 = vsel %vm268_vm0, %v1366_v19, 0.0  ;;  %v287_v23 = vsel %vm268_vm0, %v1369_v20, 0.0  ;;  %v1380_v26 = vld [vmem:[%s1323_s24 + $0x18] sm:$0xff]  ;;  %v1385_v28 = vld [vmem:[%s1323_s24 + $0x28] sm:$0xff]  ;;  %v293_v34 = vsel %vm268_vm0, %v1377_v25, 0.0  ;;  %v456_v42 = vpack.c.bf16 %v1366_v19, %v1369_v20 }
  0x6e   : > { %273 = vadd.xlane.f32.xlu0 %v272_v9  ;;  %909 = vmatprep.mubr.msk.bf16.mxu0 %vm268_vm0, %v453_v14  ;;  %v465_v27 = vpack.c.bf16 %v1380_v26, %v1377_v25  ;;  %v1388_v29 = vld [vmem:[%s1323_s24 + $0x38] sm:$0xff]  ;;  %v1391_v30 = vld [vmem:[%s1323_s24 + $0x48] sm:$0xff]  ;;  %v296_v33 = vsel %vm268_vm0, %v1380_v26, 0.0  ;;  %v299_v39 = vsel %vm268_vm0, %v1385_v28, 0.0  ;;  %v329_v57 = vmul.f32 %v1357_v13, %v1357_v13 }
  0x6f   : > { %888 = vmatpush3.bf16.msra.mxu1 %v991_v10  ;;  %v1394_v31 = vld [vmem:[%s1323_s24 + $0x58] sm:$0xff]  ;;  %v466_v35 = vpack.c.bf16 %v1388_v29, %v1385_v28  ;;  %v302_v38 = vsel %vm268_vm0, %v1388_v29, 0.0  ;;  %v845_v40 = vld [vmem:[%s1323_s24 + $0x68] sm:$0xff]  ;;  %v305_v44 = vsel %vm268_vm0, %v1391_v30, 0.0  ;;  %v348_v58 = vsel %vm268_vm0, %v330_v56, 0.0 }
  0x70   : > { %904 = vmatpush3.bf16.msra.mxu0 %v992_v11  ;;  %889 = vmatprep.subr.bf16.mxu1 %v993_v17  ;;  %v467_v37 = vpack.c.bf16 %v1394_v31, %v1391_v30  ;;  %v846_v41 = vld [vmem:[%s1323_s24 + $0x78] sm:$0xff]  ;;  %v308_v43 = vsel %vm268_vm0, %v1394_v31, 0.0  ;;  %v311_v47 = vsel %vm268_vm0, %v845_v40, 0.0  ;;  %v345_v59 = vsel %vm268_vm0, %v329_v57, 0.0 }
  0x71   : > { %285 = vadd.xlane.f32.xlu1 %v284_v15  ;;  %905 = vmatprep.subr.bf16.mxu0 %v994_v18  ;;  %v468_v45 = vpack.c.bf16 %v846_v41, %v845_v40  ;;  %v314_v46 = vsel %vm268_vm0, %v846_v41, 0.0  ;;  %v332_v60 = vmul.f32 %v1366_v19, %v1366_v19  ;;  %v331_v61 = vmul.f32 %v1369_v20, %v1369_v20 }
  0x72   : > { %282 = vadd.xlane.f32.xlu0 %v281_v16  ;;  %893 = vmatprep.mubr.msk.bf16.mxu1 %vm268_vm0, %v465_v27  ;;  %v358_v0 = vmul.f32 %v1380_v26, %v1380_v26  ;;  %v357_v1 = vmul.f32 %v1377_v25, %v1377_v25  ;;  %v360_v4 = vmul.f32 %v1388_v29, %v1388_v29 }
  0x73   : > { %890 = vmatpush3.bf16.msra.mxu1 %v993_v17  ;;  %v354_v62 = vsel %vm268_vm0, %v332_v60, 0.0  ;;  %v351_v63 = vsel %vm268_vm0, %v331_v61, 0.0  ;;  %v359_v5 = vmul.f32 %v1385_v28, %v1385_v28  ;;  %v362_v8 = vmul.f32 %v1394_v31, %v1394_v31 }
  0x74   : > { %906 = vmatpush3.bf16.msra.mxu0 %v994_v18  ;;  %891 = vmatprep.subr.bf16.mxu1 %v995_v21  ;;  %v368_v2 = vsel %vm268_vm0, %v358_v0, 0.0  ;;  %v365_v3 = vsel %vm268_vm0, %v357_v1, 0.0  ;;  %v374_v6 = vsel %vm268_vm0, %v360_v4, 0.0  ;;  %v361_v9 = vmul.f32 %v1391_v30, %v1391_v30 }
  0x75   : > { %907 = vmatprep.subr.bf16.mxu0 %v996_v24  ;;  %291 = vadd.xlane.f32.xlu1 %v290_v22  ;;  %v371_v7 = vsel %vm268_vm0, %v359_v5, 0.0  ;;  %v380_v10 = vsel %vm268_vm0, %v362_v8, 0.0  ;;  %v364_v12 = vmul.f32 %v846_v41, %v846_v41  ;;  %v363_v13 = vmul.f32 %v845_v40, %v845_v40 }
  0x76   : > { %288 = vadd.xlane.f32.xlu0 %v287_v23  ;;  %v377_v11 = vsel %vm268_vm0, %v361_v9, 0.0 }
  0x77   : > { %892 = vmatpush3.bf16.msra.mxu1 %v995_v21  ;;  %v386_v14 = vsel %vm268_vm0, %v364_v12, 0.0  ;;  %v383_v15 = vsel %vm268_vm0, %v363_v13, 0.0 }
  0x78   : > { %908 = vmatpush3.bf16.msra.mxu0 %v996_v24 }
  0x79   : > { %297 = vadd.xlane.f32.xlu1 %v296_v33 }
  0x7a   : > { %294 = vadd.xlane.f32.xlu0 %v293_v34  ;;  %894 = vmatmul.mubr.msk.bf16.vlgmr.msra.gmra.mrb[0].mxu1 %vm268_vm0, %v466_v35 }
  0x7b   : > { %910 = vmatmul.mubr.msk.bf16.vlgmr.msra.gmra.mrb[0].mxu0 %vm268_vm0, %v454_v32  ;;  %897 = vmatprep.mubr.msk.bf16.mxu1 %vm268_vm0, %v467_v37 }
  0x7c   : > { %913 = vmatprep.mubr.msk.bf16.mxu0 %vm268_vm0, %v455_v36 }
  0x7d   : > { %303 = vadd.xlane.f32.xlu1 %v302_v38 }
  0x7e   : > { %300 = vadd.xlane.f32.xlu0 %v299_v39 }
  0x81   : > { %309 = vadd.xlane.f32.xlu1 %v308_v43 }
  0x82   : > { %306 = vadd.xlane.f32.xlu0 %v305_v44  ;;  %898 = vmatmul.mubr.msk.bf16.gmra.mrb[4].mxu1 %vm268_vm0, %v468_v45 }
  0x83   : > { %914 = vmatmul.mubr.msk.bf16.gmra.mrb[4].mxu0 %vm268_vm0, %v456_v42 }
  0x85   : > { %315 = vadd.xlane.f32.xlu1 %v314_v46 }
  0x86   : > { %312 = vadd.xlane.f32.xlu0 %v311_v47 }
  0x89   : > { %337 = vadd.xlane.f32.xlu1 %v336_v50 }
  0x8a   : > { %334 = vadd.xlane.f32.xlu0 %v333_v51 }
  0x8d   : > { %343 = vadd.xlane.f32.xlu1 %v342_v54 }
  0x8e   : > { %340 = vadd.xlane.f32.xlu0 %v339_v55 }
  0x91   : > { %349 = vadd.xlane.f32.xlu1 %v348_v58 }
  0x92   : > { %346 = vadd.xlane.f32.xlu0 %v345_v59 }
  0x95   : > { %355 = vadd.xlane.f32.xlu1 %v354_v62 }
  0x96   : > { %352 = vadd.xlane.f32.xlu0 %v351_v63 }
  0x99   : > { %369 = vadd.xlane.f32.xlu1 %v368_v2 }
  0x9a   : > { %366 = vadd.xlane.f32.xlu0 %v365_v3 }
  0x9d   : > { %375 = vadd.xlane.f32.xlu1 %v374_v6 }
  0x9e   : > { %372 = vadd.xlane.f32.xlu0 %v371_v7 }
  0xa1   : > { %381 = vadd.xlane.f32.xlu1 %v380_v10 }
  0xa2   : > { %378 = vadd.xlane.f32.xlu0 %v377_v11 }
  0xa5   : > { %387 = vadd.xlane.f32.xlu1 %v386_v14 }
  0xa6   : > { %384 = vadd.xlane.f32.xlu0 %v383_v15 }
  0xf6   : > { %v277_v16 = vpop.xlane.xlu1 %276 }
  0xf7   : > { %v271_v17 = vpop.xlane.xlu0 %270 }
  0xfa   : > { %v280_v18 = vpop.xlane.xlu1 %279 }
  0xfb   : > { %v274_v19 = vpop.xlane.xlu0 %273 }
  0xfe   : > { %v286_v20 = vpop.xlane.xlu1 %285 }
  0xff   : > { %v283_v21 = vpop.xlane.xlu0 %282 }
 0x102   : > { %v292_v22 = vpop.xlane.xlu1 %291 }
 0x103   : > { %v289_v23 = vpop.xlane.xlu0 %288 }
 0x106   : > { %v298_v24 = vpop.xlane.xlu1 %297 }
 0x107   : > { %v295_v25 = vpop.xlane.xlu0 %294  ;;  %v318_v45 = vadd.f32 %v298_v24, %v274_v19 }
 0x108   : > { %v317_v41 = vadd.f32 %v295_v25, %v271_v17 }
 0x109   : > { %v1479_v55 = vmul.f32 0.0078125, %v318_v45 }
 0x10a   : > { %v304_v26 = vpop.xlane.xlu1 %303  ;;  %v1475_v48 = vmul.f32 0.0078125, %v317_v41 }
 0x10b   : > { %v301_v27 = vpop.xlane.xlu0 %300  ;;  %v320_v44 = vadd.f32 %v304_v26, %v280_v18  ;;  %v414_v5 = vmul.f32 %v1479_v55, %v1479_v55 }
 0x10c   : > { %v319_v40 = vadd.f32 %v301_v27, %v277_v16  ;;  %v413_v61 = vmul.f32 %v1475_v48, %v1475_v48 }
 0x10d   : > { %v1477_v52 = vmul.f32 0.0078125, %v320_v44 }
 0x10e   : > { %v310_v28 = vpop.xlane.xlu1 %309  ;;  %v1473_v47 = vmul.f32 0.0078125, %v319_v40 }
 0x10f   : > { %v307_v29 = vpop.xlane.xlu0 %306  ;;  %v416_v2 = vmul.f32 %v1477_v52, %v1477_v52  ;;  %v322_v6 = vadd.f32 %v310_v28, %v286_v20 }
 0x110   : > { %v415_v57 = vmul.f32 %v1473_v47, %v1473_v47  ;;  %v321_v62 = vadd.f32 %v307_v29, %v283_v21 }
 0x111   : > { %v1495_v21 = vmul.f32 0.0078125, %v322_v6 }
 0x112   : > { %v316_v30 = vpop.xlane.xlu1 %315  ;;  %v1491_v11 = vmul.f32 0.0078125, %v321_v62 }
 0x113   : > { %v313_v31 = vpop.xlane.xlu0 %312  ;;  %v324_v3 = vadd.f32 %v316_v30, %v292_v22 }
 0x114   : > { %v323_v58 = vadd.f32 %v313_v31, %v289_v23  ;;  %v417_v27 = vmul.f32 %v1491_v11, %v1491_v11 }
 0x115   : > { %v1493_v16 = vmul.f32 0.0078125, %v324_v3 }
 0x116   : > { %v338_v32 = vpop.xlane.xlu1 %337  ;;  %v1489_v9 = vmul.f32 0.0078125, %v323_v58  ;;  %v863_v58 = vld [vmem:[%s1571_s3] ss:$0 sm:$0xff] }
 0x117   : > { %v335_v33 = vpop.xlane.xlu0 %334  ;;  %v420_v30 = vmul.f32 %v1493_v16, %v1493_v16 }
 0x118   : > { %v419_v23 = vmul.f32 %v1489_v9, %v1489_v9 }
 0x11a   : > { %v344_v34 = vpop.xlane.xlu1 %343 }
 0x11b   : > { %v341_v35 = vpop.xlane.xlu0 %340 }
 0x11e   : > { %v350_v36 = vpop.xlane.xlu1 %349 }
 0x11f   : > { %v347_v37 = vpop.xlane.xlu0 %346 }
 0x122   : > { %v356_v38 = vpop.xlane.xlu1 %355 }
 0x123   : > { %v353_v39 = vpop.xlane.xlu0 %352 }
 0x126   : > { %v370_v42 = vpop.xlane.xlu1 %369 }
 0x127   : > { %v367_v43 = vpop.xlane.xlu0 %366  ;;  %v390_v49 = vadd.f32 %v370_v42, %v338_v32 }
 0x128   : > { %v389_v46 = vadd.f32 %v367_v43, %v335_v33  ;;  %v418_v33 = vmul.f32 %v1495_v21, %v1495_v21 }
 0x129   : > { %v406_v63 = vmul.f32 0.0078125, %v390_v49 }
 0x12a   : > { %v376_v50 = vpop.xlane.xlu1 %375  ;;  %v405_v56 = vmul.f32 0.0078125, %v389_v46 }
 0x12b   : > { %v373_v51 = vpop.xlane.xlu0 %372  ;;  %v392_v53 = vadd.f32 %v376_v50, %v344_v34  ;;  %v422_v12 = vsub.f32 %v406_v63, %v414_v5 }
 0x12c   : > { %v391_v54 = vadd.f32 %v373_v51, %v341_v35  ;;  %v421_v7 = vsub.f32 %v405_v56, %v413_v61 }
 0x12d   : > { %v408_v59 = vmul.f32 0.0078125, %v392_v53  ;;  %v430_v28 = vmax.f32 %v422_v12, 0.0 }
 0x12e   : > { %v407_v60 = vmul.f32 0.0078125, %v391_v54  ;;  %v382_v0 = vpop.xlane.xlu1 %381  ;;  %v429_v22 = vmax.f32 %v421_v7, 0.0 }
 0x12f   : > { %v379_v1 = vpop.xlane.xlu0 %378  ;;  %v424_v10 = vsub.f32 %v408_v59, %v416_v2  ;;  %v394_v13 = vadd.f32 %v382_v0, %v350_v36 }
 0x130   : > { %v423_v4 = vsub.f32 %v407_v60, %v415_v57  ;;  %v393_v8 = vadd.f32 %v379_v1, %v347_v37  ;;  %v437_v34 = vadd.f32 1e-05, %v429_v22 }
 0x131   : > { %v432_v24 = vmax.f32 %v424_v10, 0.0  ;;  %v410_v29 = vmul.f32 0.0078125, %v394_v13 }
 0x132   : > { %v388_v14 = vpop.xlane.xlu1 %387  ;;  %v431_v17 = vmax.f32 %v423_v4, 0.0  ;;  %v409_v20 = vmul.f32 0.0078125, %v393_v8 }
 0x133   : > { %v385_v15 = vpop.xlane.xlu0 %384  ;;  %v396_v18 = vadd.f32 %v388_v14, %v356_v38  ;;  %v440_v36 = vadd.f32 1e-05, %v432_v24  ;;  %v438_v38 = vadd.f32 1e-05, %v430_v28 }
 0x134   : > { %v395_v19 = vadd.f32 %v385_v15, %v353_v39  ;;  %v439_v31 = vadd.f32 1e-05, %v431_v17  ;;  %v425_v35 = vsub.f32 %v409_v20, %v417_v27  ;;  %v426_v39 = vsub.f32 %v410_v29, %v418_v33 }
 0x135   : > { %v412_v25 = vmul.f32 0.0078125, %v396_v18 }
 0x136   : > { %v411_v26 = vmul.f32 0.0078125, %v395_v19  ;;  %997 = vrsqrt.f32 %v439_v31  ;;  %v433_v41 = vmax.f32 %v425_v35, 0.0  ;;  %v434_v43 = vmax.f32 %v426_v39, 0.0 }
 0x137   : > { %v428_v37 = vsub.f32 %v412_v25, %v420_v30  ;;  %999 = vrsqrt.f32 %v437_v34 }
 0x138   : > { %v427_v32 = vsub.f32 %v411_v26, %v419_v23  ;;  %1001 = vrsqrt.f32 %v440_v36  ;;  %v441_v45 = vadd.f32 1e-05, %v433_v41  ;;  %v442_v49 = vadd.f32 1e-05, %v434_v43 }
 0x139   : > { %v436_v42 = vmax.f32 %v428_v37, 0.0  ;;  %1003 = vrsqrt.f32 %v438_v38 }
 0x13a   : > { %v435_v40 = vmax.f32 %v427_v32, 0.0 }
 0x13b   : > { %v444_v46 = vadd.f32 1e-05, %v436_v42 }
 0x13c   : > { %v443_v44 = vadd.f32 1e-05, %v435_v40 }
 0x13e   : > { %1005 = vrsqrt.f32 %v443_v44 }
 0x13f   : > { %1007 = vrsqrt.f32 %v441_v45 }
 0x140   : > { %v998_v50 = vpop.eup %997  ;;  %1009 = vrsqrt.f32 %v444_v46 }
 0x141   : > { %v1000_v51 = vpop.eup %999  ;;  %1011 = vrsqrt.f32 %v442_v49  ;;  %v691_v56 = vmul.f32 %v998_v50, %v1473_v47 }
 0x142   : > { %v1002_v53 = vpop.eup %1001  ;;  %v689_v57 = vmul.f32 %v1000_v51, %v1475_v48  ;;  %v1520_v48 = vld [vmem:[%s1571_s3 + $0x1] ss:$0 sm:$0xff] }
 0x143   : > { %v1004_v54 = vpop.eup %1003  ;;  %v692_v59 = vmul.f32 %v1002_v53, %v1477_v52  ;;  %v703_v61 = vmul.f32 %v863_v58, %v691_v56 }
 0x144   : > { %v690_v60 = vmul.f32 %v1004_v54, %v1479_v55  ;;  %v701_v1 = vmul.f32 %v863_v58, %v689_v57 }
 0x145   : > { %v704_v5 = vmul.f32 %v863_v58, %v692_v59  ;;  %v715_v13 = vsub.f32 %v1520_v48, %v703_v61 }
 0x146   : > { %v702_v8 = vmul.f32 %v863_v58, %v690_v60  ;;  %v713_v22 = vsub.f32 %v1520_v48, %v701_v1 }
 0x147   : > { %v716_v26 = vsub.f32 %v1520_v48, %v704_v5 }
 0x148   : > { %v1006_v62 = vpop.eup %1005  ;;  %v714_v29 = vsub.f32 %v1520_v48, %v702_v8 }
 0x149   : > { %v1008_v2 = vpop.eup %1007  ;;  %v695_v18 = vmul.f32 %v1006_v62, %v1489_v9 }
 0x14a   : > { %v1010_v6 = vpop.eup %1009  ;;  %v693_v23 = vmul.f32 %v1008_v2, %v1491_v11 }
 0x14b   : > { %v1012_v10 = vpop.eup %1011  ;;  %v696_v9 = vmul.f32 %v1010_v6, %v1493_v16  ;;  %v707_v32 = vmul.f32 %v863_v58, %v695_v18 }
 0x14c   : > { %v694_v30 = vmul.f32 %v1012_v10, %v1495_v21  ;;  %v705_v35 = vmul.f32 %v863_v58, %v693_v23 }
 0x14d   : > { %v895_v63 = vpop.f32.mrb[0].mxu1  ;;  %v708_v38 = vmul.f32 %v863_v58, %v696_v9  ;;  %v719_v43 = vsub.f32 %v1520_v48, %v707_v32 }
 0x14e   : > { %v911_v0 = vpop.f32.mrb[0].mxu0  ;;  %v547_v3 = vpop.f32.mrb[1].mxu1  ;;  %v706_v41 = vmul.f32 %v863_v58, %v694_v30 }
 0x14f   : > { %v657_v47 = vadd.f32 %v911_v0, %v895_v63  ;;  %v648_v4 = vpop.f32.mrb[1].mxu0  ;;  %v896_v7 = vpop.f32.mrb[2].mxu1  ;;  %v720_v56 = vsub.f32 %v1520_v48, %v708_v38 }
 0x150   : > { %v649_v52 = vadd.f32 %v648_v4, %v547_v3  ;;  %v912_v55 = vpop.f32.mrb[2].mxu0  ;;  %v550_v15 = vpop.f32.mrb[3].mxu1  ;;  %v718_v58 = vsub.f32 %v1520_v48, %v706_v41 }
 0x151   : > { %v683_v12 = vmul.f32 %v998_v50, %v657_v47  ;;  %v660_v14 = vadd.f32 %v912_v55, %v896_v7  ;;  %v651_v17 = vpop.f32.mrb[3].mxu0  ;;  %v717_v50 = vsub.f32 %v1520_v48, %v705_v35 }
 0x152   : > { %v681_v19 = vmul.f32 %v1000_v51, %v649_v52  ;;  %v652_v20 = vadd.f32 %v651_v17, %v550_v15 }
 0x153   : > { %v723_v24 = vadd.f32 %v715_v13, %v683_v12  ;;  %v684_v25 = vmul.f32 %v1002_v53, %v660_v14 }
 0x154   : > { %v721_v27 = vadd.f32 %v713_v22, %v681_v19  ;;  %v682_v28 = vmul.f32 %v1004_v54, %v652_v20 }
 0x155   : > { %731 = vst.msk [vmem:[%s1527_s28 + $0x10] sm:$0xff] %vm268_vm0, %v723_v24  ;;  %v724_v31 = vadd.f32 %v716_v26, %v684_v25  ;;  %v899_v33 = vpop.f32.mrb[4].mxu1 }
 0x156   : > { %729 = vst.msk [vmem:[%s1527_s28] sm:$0xff] %vm268_vm0, %v721_v27  ;;  %v722_v11 = vadd.f32 %v714_v29, %v682_v28  ;;  %v915_v34 = vpop.f32.mrb[4].mxu0  ;;  %v563_v36 = vpop.f32.mrb[5].mxu1 }
 0x157   : > { %732 = vst.msk [vmem:[%s1527_s28 + $0x18] sm:$0xff] %vm268_vm0, %v724_v31  ;;  %v673_v16 = vadd.f32 %v915_v34, %v899_v33  ;;  %v664_v37 = vpop.f32.mrb[5].mxu0  ;;  %v900_v21 = vpop.f32.mrb[6].mxu1 }
 0x158   : > { %730 = vst.msk [vmem:[%s1527_s28 + $0x8] sm:$0xff] %vm268_vm0, %v722_v11  ;;  %v665_v39 = vadd.f32 %v664_v37, %v563_v36  ;;  %v916_v40 = vpop.f32.mrb[6].mxu0  ;;  %v566_v45 = vpop.f32.mrb[7].mxu1 }
 0x159   : > { %v687_v42 = vmul.f32 %v1006_v62, %v673_v16  ;;  %v676_v44 = vadd.f32 %v916_v40, %v900_v21  ;;  %v667_v46 = vpop.f32.mrb[7].mxu0 }
 0x15a   : > { %v685_v49 = vmul.f32 %v1008_v2, %v665_v39  ;;  %v668_v51 = vadd.f32 %v667_v46, %v566_v45 }
 0x15b   : > { %v727_v53 = vadd.f32 %v719_v43, %v687_v42  ;;  %v688_v54 = vmul.f32 %v1010_v6, %v676_v44 }
 0x15c   : > { %v725_v57 = vadd.f32 %v717_v50, %v685_v49  ;;  %v686_v59 = vmul.f32 %v1012_v10, %v668_v51 }
 0x15d   : > { %735 = vst.msk [vmem:[%s1527_s28 + $0x30] sm:$0xff] %vm268_vm0, %v727_v53  ;;  %v728_v60 = vadd.f32 %v720_v56, %v688_v54 }
 0x15e   : > { %733 = vst.msk [vmem:[%s1527_s28 + $0x20] sm:$0xff] %vm268_vm0, %v725_v57  ;;  %v726_v61 = vadd.f32 %v718_v58, %v686_v59 }
 0x15f   : > { %736 = vst.msk [vmem:[%s1527_s28 + $0x38] sm:$0xff] %vm268_vm0, %v728_v60 }
 0x160   : > { %734 = vst.msk [vmem:[%s1527_s28 + $0x28] sm:$0xff] %vm268_vm0, %v726_v61 }
 0x161 PF: > { %p15_p6 = scmp.ge.s32.totalorder %s1267_s7, 4   ;;  %s1585_s15 = smov %s1129_s16 }
 0x162   : > { %s1586_s16 = smov %s1133_s17  ;;  %s1587_s17 = smov %s1278_s12 }
 0x163   : > { %s1588_s18 = smov %s1267_s7  ;;  %17 = sbr.rel (!%p15_p6) target bundleno = 4 (0x4), region = 85 }
 0x16a   :  { %759 = vsyncpa [#allocation3], 1 }
 0x16b   :  { %761 = vsyncpa [#allocation3 + $0x1], 1 }
 0x16c   :  { %762 = vsyncpa [#allocation5], 1 }

</bundles_post_ra>
